<compile_context>
chip_gen: v7x
topology: tpu7x:2x2x1
jax: 0.10.0
libtpu: 0.0.40
codegen_flags: <defaults>
</compile_context>

<pallas_src>
import functools

import jax
import jax.numpy as jnp
from jax.experimental import pallas as pl
from jax.experimental.pallas import tpu as pltpu


def _round_up(n, m):
    return ((n + m - 1) // m) * m


def _pick_tile(n, preferred):
    """Largest preferred tile that divides n, else the full extent."""
    for t in preferred:
        if n % t == 0:
            return t
    return n


def _seq_tiles(n):
    """Return (n_pad, tile_q, tile_k) for the flash kernel.

    For N > 128 pad to a multiple of 128 so tile_q=128 always divides and the
    parallel q-tile grid extent is >= 2 (keeps both v7x TensorCores busy).
    tile_q stays small (spill-safe, incl. v5e); tile_k prefers wide tiles to
    keep the MXU / DMA efficient. For tiny N, use the (8-aligned) full extent.
    """
    if n <= 128:
        n_pad = _round_up(n, 8)
        return n_pad, n_pad, n_pad
    n_pad = _round_up(n, 128)
    tile_q = 128  # 256 can be slightly better on v6e/v7x; 128 is safe everywhere.
    if n_pad % 512 == 0:
        tile_k = 512
    elif n_pad % 256 == 0:
        tile_k = 256
    else:
        tile_k = 128
    return n_pad, tile_q, tile_k


_VMEM_LIMIT = 48 * 1024 * 1024  # <= v7x 64 MiB physical; plenty on v5e/v6e.


# --------------------------- Kernel 1: QKV projection ---------------------------

def _qkv_proj_kernel(x_ref, w_ref, o_ref):
    # x_ref: (1, TN, C), w_ref: (C, TC3), o_ref: (1, TN, TC3).
    # Operands stay in their (bf16) input dtype; MXU accumulates in f32.
    o_ref[0] = jnp.dot(
        x_ref[0], w_ref[...], preferred_element_type=jnp.float32
    ).astype(o_ref.dtype)


def _qkv_projection(x, w_qkv, *, tile_n, tile_c3):
    B, N, C = x.shape
    C3 = w_qkv.shape[1]
    return pl.pallas_call(
        _qkv_proj_kernel,
        out_shape=jax.ShapeDtypeStruct((B, N, C3), x.dtype),
        grid=(B, N // tile_n, C3 // tile_c3),
        in_specs=[
            pl.BlockSpec((1, tile_n, C), lambda b, i, j: (b, i, 0)),
            pl.BlockSpec((C, tile_c3), lambda b, i, j: (0, j)),
        ],
        out_specs=pl.BlockSpec((1, tile_n, tile_c3), lambda b, i, j: (b, i, j)),
        compiler_params=pltpu.CompilerParams(
            dimension_semantics=("parallel", "parallel", "parallel"),
            vmem_limit_bytes=_VMEM_LIMIT,
        ),
    )(x, w_qkv)


# ------------- Kernel 2: flash attention fused with output projection -------------

def _flash_proj_kernel(q_ref, kT_ref, v_ref, wp_ref, bp_ref, o_ref,
                       m_scr, l_scr, acc_scr, out_scr,
                       *, n_valid, tile_k, needs_mask):
    # Grid: (B, q_tiles, H, kv_tiles); heads and kv tiles are reduction axes.
    h = pl.program_id(2)
    ki = pl.program_id(3)
    n_h = pl.num_programs(2)
    n_kv = pl.num_programs(3)

    @pl.when(jnp.logical_and(h == 0, ki == 0))
    def _():
        out_scr[...] = jnp.zeros_like(out_scr)

    @pl.when(ki == 0)
    def _():
        m_scr[...] = jnp.full(m_scr.shape, -jnp.inf, dtype=m_scr.dtype)
        l_scr[...] = jnp.zeros_like(l_scr)
        acc_scr[...] = jnp.zeros_like(acc_scr)

    q = q_ref[0, 0]           # (TQ, hd), scale already folded into Wq
    kT = kT_ref[0, 0]         # (hd, TK), K pre-transposed -> plain NN matmul
    v = v_ref[0, 0]           # (TK, hd)

    # Scores with f32 accumulation; operands stay bf16 for the MXU.
    s = jnp.dot(q, kT, preferred_element_type=jnp.float32)        # (TQ, TK)

    if needs_mask:
        # Mask padded kv columns (static trace-time branch; only emitted when
        # the sequence was padded). Padding never covers a whole kv tile.
        col = ki * tile_k + jax.lax.broadcasted_iota(jnp.int32, s.shape, 1)
        s = jnp.where(col < n_valid, s, -1e30)

    # Online softmax update (all elementwise math in f32).
    m_prev = m_scr[...]
    m_new = jnp.maximum(m_prev, jnp.max(s, axis=-1, keepdims=True))
    alpha = jnp.exp(m_prev - m_new)
    p = jnp.exp(s - m_new)
    l_scr[...] = alpha * l_scr[...] + jnp.sum(p, axis=-1, keepdims=True)
    acc_scr[...] = alpha * acc_scr[...] + jnp.dot(
        p.astype(v.dtype), v, preferred_element_type=jnp.float32
    )
    m_scr[...] = m_new

    # Finished this head's kv loop: normalize and fold into the output
    # projection accumulator (sum over heads of ctx_h @ Wproj[h]).
    @pl.when(ki == n_kv - 1)
    def _():
        ctx = acc_scr[...] * pl.reciprocal(l_scr[...], approx=True)   # (TQ, hd)
        out_scr[...] += jnp.dot(
            ctx.astype(wp_ref.dtype), wp_ref[0],
            preferred_element_type=jnp.float32,
        )

    # Last head, last kv tile: add bias, single lane-dense full-C store.
    @pl.when(jnp.logical_and(h == n_h - 1, ki == n_kv - 1))
    def _():
        o_ref[0] = (out_scr[...] + bp_ref[...].astype(jnp.float32)).astype(o_ref.dtype)


def _flash_attention_proj(q, kT, v, w_proj_h, b_proj, *,
                          tile_q, tile_k, n_valid, out_dtype):
    B, H, n_pad, hd = q.shape
    C = w_proj_h.shape[-1]
    needs_mask = n_pad != n_valid
    kernel = functools.partial(
        _flash_proj_kernel, n_valid=n_valid, tile_k=tile_k, needs_mask=needs_mask)
    grid = (B, n_pad // tile_q, H, n_pad // tile_k)
    # NOTE: pl.Buffered(3) on the K/V specs is a cheap extra knob once tile_k
    # is small; left at the default double-buffering here.
    return pl.pallas_call(
        kernel,
        out_shape=jax.ShapeDtypeStruct((B, n_pad, C), out_dtype),
        grid=grid,
        in_specs=[
            pl.BlockSpec((1, 1, tile_q, hd), lambda b, qi, h, ki: (b, h, qi, 0)),
            pl.BlockSpec((1, 1, hd, tile_k), lambda b, qi, h, ki: (b, h, 0, ki)),
            pl.BlockSpec((1, 1, tile_k, hd), lambda b, qi, h, ki: (b, h, ki, 0)),
            pl.BlockSpec((1, hd, C), lambda b, qi, h, ki: (h, 0, 0)),
            pl.BlockSpec((1, C), lambda b, qi, h, ki: (0, 0)),
        ],
        out_specs=pl.BlockSpec((1, tile_q, C), lambda b, qi, h, ki: (b, qi, 0)),
        scratch_shapes=[
            pltpu.VMEM((tile_q, 1), jnp.float32),    # running max m
            pltpu.VMEM((tile_q, 1), jnp.float32),    # running sum l
            pltpu.VMEM((tile_q, hd), jnp.float32),   # per-head context acc
            pltpu.VMEM((tile_q, C), jnp.float32),    # output-projection acc
        ],
        compiler_params=pltpu.CompilerParams(
            dimension_semantics=("parallel", "parallel", "arbitrary", "arbitrary"),
            vmem_limit_bytes=_VMEM_LIMIT,
        ),
    )(q, kT, v, w_proj_h, b_proj)


# --------------------------------- Wrapper ---------------------------------

def attention_forward(x, w_qkv, w_proj, b_proj, *, num_heads: int,
                      compute_dtype=jnp.bfloat16):
    """x: (B, N, C); w_qkv: (C, 3C); w_proj: (C, C); b_proj: (C,).

    Weights are stored pre-transposed as (in, out) so kernels do plain x @ W.
    MXU operands are cast to `compute_dtype` (bf16 by default); accumulation
    and softmax stay f32; output keeps x.dtype.
    """
    B, N, C = x.shape
    hd = C // num_heads
    scale = float(hd) ** -0.5
    out_dtype = x.dtype

    # Fold the softmax scale into the Q columns of the fused QKV weight
    # (trace-time, O(C^2); removes any in-kernel score scaling).
    w_qkv_eff = jnp.concatenate([w_qkv[:, :C] * scale, w_qkv[:, C:]], axis=1)
    w_qkv_eff = w_qkv_eff.astype(compute_dtype)

    # Pad N to an (8,128)-friendly extent; padded kv columns are masked in the
    # flash kernel, padded q rows are dropped after the call.
    n_pad, tile_q, tile_k = _seq_tiles(N)
    if n_pad != N:
        x = jnp.pad(x, ((0, 0), (0, n_pad - N), (0, 0)))
    x_c = x.astype(compute_dtype)

    C3 = 3 * C
    tile_n = _pick_tile(n_pad, (512, 256, 128, 64, 32, 16, 8))
    tile_c3 = _pick_tile(C3, (1536, 1024, 768, 512, 384, 256, 128))

    # Kernel 1: QKV projection (N-tile, C) x (C, 3C-tile).
    qkv = _qkv_projection(x_c, w_qkv_eff, tile_n=tile_n, tile_c3=tile_c3)

    # Head split via plain XLA reshape/transpose (kept out of the kernels so
    # no sub-lane slicing / relayout happens inside Pallas). K is produced
    # pre-transposed (B, H, hd, N) so the flash kernel does a plain NN matmul
    # with a lane-dense K tile.
    qkv = qkv.reshape(B, n_pad, 3, num_heads, hd)
    q = qkv[:, :, 0].transpose(0, 2, 1, 3)      # (B, H, N_pad, hd)
    kT = qkv[:, :, 1].transpose(0, 2, 3, 1)     # (B, H, hd, N_pad)
    v = qkv[:, :, 2].transpose(0, 2, 1, 3)      # (B, H, N_pad, hd)
    # TODO(synk): optional refactor — have kernel 1 write q/kT/v directly in
    # these layouts to save one full HBM round-trip of the (B,N,3C) tensor.

    w_proj_h = w_proj.reshape(num_heads, hd, C).astype(compute_dtype)   # (H, hd, C)
    b_proj_2d = b_proj.reshape(1, C).astype(jnp.float32)

    # Kernel 2: flash attention + fused output projection.
    out = _flash_attention_proj(
        q, kT, v, w_proj_h, b_proj_2d,
        tile_q=tile_q, tile_k=tile_k, n_valid=N, out_dtype=out_dtype)

    if n_pad != N:
        out = out[:, :N]
    return out

    # TODO(synk): attn_drop / proj_drop (both 0.0 by default) and
    # qk_norm=False LayerNorms are identity ops and intentionally omitted.


def attention_reference(x, w_qkv, w_proj, b_proj, *, num_heads: int):
    """Pure-JAX f32 reference mirroring the PyTorch module."""
    B, N, C = x.shape
    hd = C // num_heads
    scale = float(hd) ** -0.5
    qkv = jnp.einsum("bnc,cd->bnd", x, w_qkv)                        # (B, N, 3C)
    qkv = qkv.reshape(B, N, 3, num_heads, hd).transpose(2, 0, 3, 1, 4)
    q, k, v = qkv[0], qkv[1], qkv[2]                                 # (B, H, N, hd)
    s = jnp.einsum("bhnd,bhmd->bhnm", q, k) * scale
    p = jax.nn.softmax(s, axis=-1)
    ctx = jnp.einsum("bhnm,bhmd->bhnd", p, v)                        # (B, H, N, hd)
    ctx = ctx.transpose(0, 2, 1, 3).reshape(B, N, C)
    return jnp.einsum("bnc,cd->bnd", ctx, w_proj) + b_proj


if __name__ == "__main__":
    # Small shapes: dim=32, num_heads=4 -> head_dim=8; B=2, N=8 tokens.
    B, N, C = 2, 8, 32
    num_heads = 4

    key = jax.random.PRNGKey(0)
    kx, kqkv, kproj, kb = jax.random.split(key, 4)

    x = jax.random.normal(kx, (B, N, C), dtype=jnp.float32)
    # Synthetic params; PyTorch Linear weights transposed to (in, out).
    w_qkv = jax.random.normal(kqkv, (C, 3 * C), dtype=jnp.float32) * 0.05
    w_proj = jax.random.normal(kproj, (C, C), dtype=jnp.float32) * 0.05
    b_proj = jax.random.normal(kb, (C,), dtype=jnp.float32) * 0.05

    out = attention_forward(x, w_qkv, w_proj, b_proj, num_heads=num_heads)
    out = jax.block_until_ready(out)

    ref = attention_reference(x, w_qkv, w_proj, b_proj, num_heads=num_heads)
    assert out.shape == (B, N, C)
    max_err = float(jnp.max(jnp.abs(out.astype(jnp.float32) - ref)))
    # bf16 MXU operands (f32 accumulation) -> compare against f32 reference
    # with a bf16-appropriate tolerance.
    assert jnp.allclose(out.astype(jnp.float32), ref, atol=2e-2, rtol=2e-2), (
        f"mismatch vs reference (max err {max_err})")

    print("KERNEL_OK")
</pallas_src>

<mosaic_0001>
module attributes {stable_mosaic.version = 11 : i64} {
  func.func @_qkv_proj_kernel(%arg0: i32, %arg1: i32, %arg2: i32, %arg3: memref<1x8x32xbf16, #tpu.memory_space<vmem>>, %arg4: memref<32x96xbf16, #tpu.memory_space<vmem>>, %arg5: memref<1x8x96xbf16, #tpu.memory_space<vmem>>) attributes {dimension_semantics = [#tpu.dimension_semantics<parallel>, #tpu.dimension_semantics<parallel>, #tpu.dimension_semantics<parallel>], iteration_bounds = array<i64: 2, 1, 1>, scalar_prefetch = 0 : i64, scratch_operands = 0 : i64, tpu.core_type = #tpu.core_type<tc>, window_params = [{transform_indices = @transform_0, window_bounds = array<i64: 1, 8, 32>}, {transform_indices = @transform_1, window_bounds = array<i64: 32, 96>}, {transform_indices = @transform_2, window_bounds = array<i64: 1, 8, 96>}]} {
    %c0 = arith.constant 0 : index
    %c0_0 = arith.constant 0 : index
    %c0_1 = arith.constant 0 : index
    %0 = vector.load %arg3[%c0, %c0_0, %c0_1] : memref<1x8x32xbf16, #tpu.memory_space<vmem>>, vector<1x8x32xbf16>
    %1 = vector.shape_cast %0 : vector<1x8x32xbf16> to vector<8x32xbf16>
    %c0_2 = arith.constant 0 : index
    %c0_3 = arith.constant 0 : index
    %2 = vector.load %arg4[%c0_2, %c0_3] : memref<32x96xbf16, #tpu.memory_space<vmem>>, vector<32x96xbf16>
    %cst = arith.constant dense<0.000000e+00> : vector<8x96xf32>
    %3 = tpu.matmul %1, %2, %cst {dimension_numbers = #tpu.dot_dimension_numbers<[1], [0], [0], [1], [0, 0, 1, 1], [], []>} : vector<8x32xbf16>, vector<32x96xbf16>, vector<8x96xf32> -> vector<8x96xf32>
    %4 = arith.truncf %3 : vector<8x96xf32> to vector<8x96xbf16>
    %c0_4 = arith.constant 0 : index
    %c0_5 = arith.constant 0 : index
    %c0_6 = arith.constant 0 : index
    %5 = vector.load %arg5[%c0_4, %c0_5, %c0_6] : memref<1x8x96xbf16, #tpu.memory_space<vmem>>, vector<1x8x96xbf16>
    %6 = vector.shape_cast %5 : vector<1x8x96xbf16> to vector<8x96xbf16>
    %7 = vector.shape_cast %4 : vector<8x96xbf16> to vector<1x8x96xbf16>
    tpu.vector_store %arg5[%c0_4, %c0_5, %c0_6], %7 {strides = array<i32>} : memref<1x8x96xbf16, #tpu.memory_space<vmem>>, vector<1x8x96xbf16>,
    return
  }
  func.func @transform_0(%arg0: i32, %arg1: i32, %arg2: i32) -> (i32, i32, i32) {
    %c0_i32 = arith.constant 0 : i32
    %c0_i32_0 = arith.constant 0 : i32
    return %arg0, %arg1, %c0_i32 : i32, i32, i32
  }
  func.func @transform_1(%arg0: i32, %arg1: i32, %arg2: i32) -> (i32, i32) {
    %c0_i32 = arith.constant 0 : i32
    %c0_i32_0 = arith.constant 0 : i32
    return %c0_i32, %arg2 : i32, i32
  }
  func.func @transform_2(%arg0: i32, %arg1: i32, %arg2: i32) -> (i32, i32, i32) {
    %c0_i32 = arith.constant 0 : i32
    return %arg0, %arg1, %arg2 : i32, i32, i32
  }
}

</mosaic_0001>

<bundles_post_ra>
// kernel: tpu_custom_call.1
= control target key start
LH: loop header
LB: loop body
LE: loop exit
PB: predicated region body
PF: predicated region fallthrough
CT: control target
= control target key end

     0   :  { %7 = vsyncpa [#allocation3], 0  ;;  %s874_s0 = inlined_call_operand.hbm [shape: bf16[2,8,32], index: 0, kind: input, shape index: {}]   ;;  %s875_s1 = inlined_call_operand.hbm [shape: bf16[32,96], index: 1, kind: input, shape index: {}]   ;;  %s876_s2 = inlined_call_operand.hbm [shape: bf16[2,8,96], index: 2, kind: output, shape index: {}]  }
   0x1   :  { %9 = vsyncpa [#allocation3 + $0x1], 0 }
   0x2   :  { %10 = vsyncpa [#allocation6], 0 }
   0x3   :  { %11 = vsyncpa [#allocation4], 0 }
   0x4   :  { %13 = vsyncpa [#allocation4 + $0x1], 0  ;;  %s660_s9 = smov 0   ;;  %s662_s10 = smov 0  }
   0x5   :  { %s664_s11 = smov 0   ;;  %s666_s12 = smov 0  }
   0x6   :  { %s668_s13 = smov 0   ;;  %s670_s14 = smov 0  }
   0x7 LB: > { %s384_s15 = sadd.s32 4294967295, %s636_s14   ;;  %s385_s16 = sadd.s32 4294967294, %s636_s14   ;;  %s636_s14 = sphi %s670_s14, %s19_s14   ;;  %s632_s13 = sphi %s668_s13, %s900_s13   ;;  %s628_s12 = sphi %s666_s12, %s899_s12   ;;  %s624_s11 = sphi %s664_s11, %s898_s11   ;;  %s620_s10 = sphi %s662_s10, %s897_s10   ;;  %s616_s9 = sphi %s660_s9, %s896_s9  }
   0x8   : > { %p60_p0 = scmp.ne.s32.totalorder %s620_s10, %s616_s9  ;;  %p694_p1 = scmp.eq.s32.totalorder %s384_s15, 0 }
   0x9   : > { %p698_p2 = scmp.eq.s32.totalorder %s384_s15, 1  ;;  %p120_p3 = scmp.eq.s32.totalorder %s385_s16, 1 }
   0xa   : > { %s881_s17 = scalar_select %p694_p1, 1, 0 }
   0xb   : > { %s882_s18 = scalar_select %p698_p2, 1, 0 }
   0xc   : > { %p704_p4 = por %p694_p1, %p60_p0  ;;  %p386_p5 = scmp.ge.s32.totalorder %s636_s14, 1 }
   0xd   : > { %p709_p6 = por %p120_p3, %p60_p0  ;;  %p127_p7 = scmp.lt.s32.totalorder %s636_s14, 3 }
   0xe   : > { %s883_s19 = scalar_select %p704_p4, 1, 0 }
   0xf   : > { %s884_s20 = scalar_select %p709_p6, 1, 0 }
  0x10   : > { %p714_p8 = pnand %p386_p5, %p127_p7  ;;  %s638_s22 = smov [#allocation5]  }
  0x11   : > { %s141_s23 = sshll.u32 %s638_s22, 4  ;;  %s38_s25 = sadd.s32 1, %s632_s13  ;;  %s142_s23 = int_to_ptr.vmem [resolvable:$true] %s141_s23 }
  0x12   : > { %s885_s21 = scalar_select %p714_p8, 1, 0 }
  0x13   : > { %p421_p9 = pneg %p714_p8  ;;  %s492_s28 = scalar_lea.hbm %s875_s1, 256 }
  0x14   : > { %p493_p12 = scmp.ne.s32.totalorder %s875_s1, %s492_s28  ;;  %p499_p5 = scmp.lt.u32.totalorder %s492_s28, %s875_s1 }
  0x15   : > { %p723_p11 = pnand %p421_p9, %p694_p1 }
  0x17   : > { %p494_p13 = pneg %p723_p11 }
  0x19   : > { %p495_p0 = pnand %p494_p13, %p493_p12 }
  0x1b   : > { %p496_p3 = pneg %p495_p0 }
  0x1d   : > { %p501_p7 = pnand %p499_p5, %p496_p3 }
  0x1f   : > { %504 = shalt.err (!%p501_p7)
}
  0x20   : > { %s505_s5 = scalar_lea.vmem %s142_s23, 256  ;;  %p513_p1 = scmp.lt.s32.totalorder %s142_s23, %s142_s23 }
  0x21   : > { %p506_p9 = scmp.ne.s32.totalorder %s142_s23, %s505_s5  ;;  %p514_p4 = scmp.lt.s32.totalorder %s505_s5, %s505_s5 }
  0x23   : > { %p508_p10 = pnand %p506_p9, %p494_p13  ;;  %p515_p8 = por %p514_p4, %p513_p1 }
  0x25   : > { %p509_p6 = pneg %p508_p10 }
  0x27   : > { %p516_p2 = pnand %p515_p8, %p509_p6 }
  0x29   : > { %519 = shalt.err (!%p516_p2)
}
  0x2a   : > { %s639_s6 = smov 64   ;;  %s640_s7 = smov 4  }
  0x2b   : > { %424 = dma.hbm_to_vmem [thread:$0]  (!%p723_p11), %s875_s1, 256, %s142_s23, [#allocation6], %s639_s6, %s639_s6, %s640_s7  }
  0x2c   : > { %p40_p1 = scmp.ge.s32.totalorder %s38_s25, 2  ;;  %s47_s16 = sadd.s32 1, %s624_s11 }
  0x2d   : > { %p54_p2 = scmp.ne.s32.totalorder %s624_s11, %s620_s10  ;;  %p55_p4 = scmp.eq.s32.totalorder %s636_s14, 0 }
  0x2e   : > { %s902_s25 = smov (%p40_p1, %s38_s25), 0  ;;  %p888_p8 = scmp.ne.s32.totalorder %s882_s18, 0 }
  0x2f   : > { %p750_p6 = por %p55_p4, %p54_p2  ;;  %s42_s24 = ssub.s32 %s632_s13, %s902_s25 }
  0x30   : > { %p756_p10 = por %p888_p8, %p54_p2  ;;  %p434_p12 = scmp.lt.s32.totalorder %s636_s14, 2 }
  0x31   : > { %p45_p11 = scmp.eq.s32.totalorder %s42_s24, 0  ;;  %s155_s23 = sand.u32 1, %s624_s11  }
  0x32   : > { %s389_s27 = sshll.u32 %s155_s23, 2  ;;  %s390_s29 = sshll.u32 %s632_s13, 6 }
  0x33   : > { %s765_s28 = scalar_select %p45_p11, %s624_s11, %s47_s16  }
  0x34   : > { %s771_s4 = scalar_lea.hbm %s874_s0, %s390_s29  ;;  %s159_s18 = scalar_lea.vmem [#allocation2], %s389_s27 }
  0x35   : > { %s167_s5 = sshll.u32 %s159_s18, 4  ;;  %p777_p13 = pnand %p434_p12, %p750_p6  ;;  %s773_s5 = int_to_ptr.vmem [resolvable:$true] %s167_s5 }
  0x36   : > { %s156_s7 = scalar_lea.sflag [#allocation3], %s155_s23  ;;  %s520_s8 = scalar_lea.hbm %s771_s4, 64 }
  0x37   : > { %p521_p0 = scmp.ne.s32.totalorder %s771_s4, %s520_s8  ;;  %p522_p3 = pneg %p777_p13 }
  0x38   : > { %s525_s24 = scalar_lea.hbm %s874_s0, 128  ;;  %p526_p9 = scmp.lt.u32.totalorder %s771_s4, %s874_s0 }
  0x39   : > { %p523_p5 = pnand %p522_p3, %p521_p0  ;;  %p527_p1 = scmp.lt.u32.totalorder %s525_s24, %s520_s8 }
  0x3a   : > { %p529_p4 = scmp.lt.u32.totalorder %s520_s8, %s771_s4 }
  0x3b   : > { %p524_p7 = pneg %p523_p5  ;;  %p528_p2 = por %p527_p1, %p526_p9 }
  0x3d   : > { %p530_p6 = por %p529_p4, %p528_p2 }
  0x3f   : > { %p531_p8 = pnand %p530_p6, %p524_p7 }
  0x41   : > { %534 = shalt.err (!%p531_p8)
}
  0x42   : > { %s535_s23 = scalar_lea.vmem %s773_s5, 64  ;;  %s641_s29 = smov [#allocation2]  }
  0x43   : > { %p536_p12 = scmp.ne.s32.totalorder %s773_s5, %s535_s23  ;;  %s540_s30 = sshll.u32 %s641_s29, 4  ;;  %s541_s30 = int_to_ptr.vmem [resolvable:$false] %s540_s30 }
  0x44   : > { %s542_s3 = scalar_lea.vmem %s541_s30, 128  ;;  %p543_p5 = scmp.lt.s32.totalorder %s773_s5, %s541_s30 }
  0x45   : > { %p538_p11 = pnand %p536_p12, %p522_p3  ;;  %p544_p9 = scmp.lt.s32.totalorder %s542_s3, %s535_s23 }
  0x47   : > { %p539_p0 = pneg %p538_p11  ;;  %p545_p1 = por %p544_p9, %p543_p5 }
  0x49   : > { %p546_p2 = pnand %p545_p1, %p539_p0 }
  0x4b   : > { %549 = shalt.err (!%p546_p2)
}
  0x4c   : > { %428 = dma.hbm_to_vmem [thread:$0]  (!%p777_p13), %s771_s4, 64, %s773_s5, %s156_s7  }
  0x4d   : > { %p891_p7 = scmp.ne.s32.totalorder %s885_s21, 0 }
  0x4e   : > { %s809_s18 = sand.u32 (!%p891_p7), 1, %s620_s10   ;;  %p892_p3 = scmp.ne.s32.totalorder (!%p891_p7), %s883_s19, 0 }
  0x4f   : > { %176 = sbr.rel (%p891_p7) target bundleno = 327 (0x147), region = 28  ;;  %s392_s8 = sshll.u32 (!%p891_p7), %s809_s18, 2 }
  0x50   : > { %s179_s15 = scalar_lea.sflag (!%p891_p7), [#allocation3], %s809_s18  ;;  %s182_s16 = scalar_lea.vmem (!%p891_p7), [#allocation2], %s392_s8 }
  0x56   : > { %603 = dma.done.wait (%p892_p3), %s179_s15, 64  }
  0x57   : > { %605 = vsyncadd (%p892_p3), %s179_s15, 4294967232  ;;  %p893_p4 = scmp.ne.s32.totalorder %s881_s17, 0 }
  0x59   : > { %607 = dma.done.wait (%p893_p4), [#allocation6], 256  }
  0x5a   : > { %609 = vsyncadd (%p893_p4), [#allocation6], 4294967040  ;;  %v642_v0 = vmov 0.0   ;;  %vm643_vm0 = vmmov 0   ;;  %v490_v1 = vld [vmem:[#allocation5] sm:$0xff]   ;;  %v491_v2 = vld [vmem:[#allocation5 + $0x8] sm:$0xff]  }
  0x5b   : > { %405 = vmatprep.subr.bf16.mxu0 %v642_v0  ;;  %409 = vmatprep.mubr.msk.bf16.mxu0 %vm643_vm0, %v642_v0  ;;  %v208_v3 = vld [vmem:[%s182_s16] sm:$0xf]  ;;  %vm225_vm1 = vcmask 261120   ;;  %s399_s19 = sshll.u32 %s628_s12, 6  ;;  %s206_s21 = scalar_lea.vmem [#allocation7], %s392_s8  ;;  %vm270_vm2 = vcmask 781312  }
  0x5c   : > { %406 = vmatpush3.bf16.msra.mxu0 %v490_v1  ;;  %s288_s4 = sshll.u32 %s206_s21, 4  ;;  %s825_s6 = scalar_lea.hbm %s876_s2, %s399_s19  ;;  %s827_s4 = int_to_ptr.vmem [resolvable:$true] %s288_s4 }
  0x5d   : > { %407 = vmatprep.subr.bf16.mxu0 %v642_v0  ;;  %s273_s12 = scalar_lea.sflag [#allocation4], %s809_s18  ;;  %s550_s7 = scalar_lea.vmem %s827_s4, 64 }
  0x5e   : > { %p551_p13 = scmp.ne.s32.totalorder %s827_s4, %s550_s7  ;;  %s644_s24 = smov [#allocation7]  }
  0x5f   : > { %s554_s22 = sshll.u32 %s644_s24, 4  ;;  %s555_s22 = int_to_ptr.vmem [resolvable:$false] %s554_s22 }
  0x60   : > { %408 = vmatpush3.bf16.msra.mxu0 %v491_v2  ;;  %p552_p6 = pnand %p551_p13, %p756_p10  ;;  %s556_s27 = scalar_lea.vmem %s555_s22, 128 }
  0x61   : > { %p557_p12 = scmp.lt.s32.totalorder %s827_s4, %s555_s22  ;;  %p558_p11 = scmp.lt.s32.totalorder %s556_s27, %s550_s7 }
  0x62   : > { %p553_p8 = pneg %p552_p6 }
  0x63   : > { %410 = vmatmul.mubr.msk.bf16.vlgmr.msra.gmra.mrb[0].mxu0 %vm225_vm1, %v208_v3  ;;  %p559_p0 = por %p558_p11, %p557_p12 }
  0x65   : > { %p560_p5 = pnand %p559_p0, %p553_p8 }
 0x136   : > { %v263_v4 = vpop.f32.mrb[0].mxu0 }
 0x137   : > { %v269_v5 = vpack.c.bf16 %v263_v4, %v263_v4  ;;  %v411_v6 = vpop.f32.mrb[1].mxu0 }
 0x138   : > { %v266_v7 = vpop.f32.mrb[2].mxu0 }
 0x139   : > { %v412_v8 = vpop.f32.mrb[3].mxu0  ;;  %271 = vst.msk [vmem:[%s206_s21] sm:$0xf] %vm270_vm2, %v269_v5 }
 0x13a   : > { %563 = shalt.err (!%p560_p5)
}
 0x13b   : > { %s564_s23 = scalar_lea.hbm %s825_s6, 64  ;;  %s568_s3 = scalar_lea.hbm %s876_s2, 128 }
 0x13c   : > { %p565_p9 = scmp.ne.s32.totalorder %s825_s6, %s564_s23  ;;  %p569_p7 = scmp.lt.u32.totalorder %s825_s6, %s876_s2 }
 0x13d   : > { %p570_p3 = scmp.lt.u32.totalorder %s568_s3, %s564_s23  ;;  %p572_p13 = scmp.lt.u32.totalorder %s564_s23, %s825_s6 }
 0x13e   : > { %p566_p1 = pnand %p565_p9, %p756_p10 }
 0x13f   : > { %p571_p4 = por %p570_p3, %p569_p7 }
 0x140   : > { %p567_p2 = pneg %p566_p1 }
 0x141   : > { %p573_p6 = por %p572_p13, %p571_p4 }
 0x143   : > { %p574_p8 = pnand %p573_p6, %p567_p2 }
 0x145   : > { %577 = shalt.err (!%p574_p8)
}
 0x146   : > { %419 = dma.vmem_to_hbm [thread:$0]  (%p756_p10), %s827_s4, 64, %s825_s6, %s273_s12  }
 0x147 PF: > { %s300_s15 = sand.u32 1, %s616_s9   ;;  %p894_p12 = scmp.ne.s32.totalorder %s884_s20, 0 }
 0x148   : > { %p895_p11 = scmp.ge.s32.totalorder %s636_s14, 2  ;;  %s301_s16 = scalar_lea.sflag [#allocation4], %s300_s15 }
 0x14a   : > { %p430_p0 = pnand %p895_p11, %p894_p12 }
 0x14c   : > { %611 = dma.done.wait (!%p430_p0), %s301_s16, 64  }
 0x14d   : > { %613 = vsyncadd (!%p430_p0), %s301_s16, 4294967232  ;;  %s19_s14 = sadd.s32 1, %s636_s14   ;;  %s896_s9 = smov %s620_s10 }
 0x14e   : > { %p16_p5 = scmp.ge.s32.totalorder %s19_s14, 4   ;;  %s897_s10 = smov %s624_s11 }
 0x14f   : > { %s898_s11 = smov %s765_s28  ;;  %s899_s12 = smov %s632_s13 }
 0x150   : > { %s900_s13 = smov %s902_s25  ;;  %18 = sbr.rel (!%p16_p5) target bundleno = 7 (0x7), region = 78 }
 0x157   :  { %306 = vsyncpa [#allocation3], 1 }
 0x158   :  { %308 = vsyncpa [#allocation3 + $0x1], 1 }
 0x159   :  { %309 = vsyncpa [#allocation6], 1 }
 0x15a   :  { %310 = vsyncpa [#allocation4], 1 }
 0x15b   :  { %312 = vsyncpa [#allocation4 + $0x1], 1 }

</bundles_post_ra>
